<compile_context>
chip_gen: v7x
topology: tpu7x:2x2x1
jax: 0.10.0
libtpu: 0.0.40
codegen_flags: <defaults>
</compile_context>

<pallas_src>
import jax
import jax.numpy as jnp
from jax import lax
from jax.experimental import pallas as pl
from jax.experimental.pallas import tpu as pltpu


def linear_add_kernel(x_ref, w_ref, b_ref, other_ref, o_ref):
    # x_ref:     (B, Din)    VMEM
    # w_ref:     (Dout, Din) VMEM  (PyTorch Linear weight layout, no host transpose)
    # b_ref:     (1, Dout)   VMEM
    # other_ref: (1, 1)      SMEM scalar parameter
    # o_ref:     (B, Dout)   VMEM
    acc = lax.dot_general(
        x_ref[...],
        w_ref[...],
        dimension_numbers=(((1,), (1,)), ((), ())),   # contract Din with Din
        preferred_element_type=jnp.float32,
    )                                                  # (B, Dout) on the MXU
    o_ref[...] = (acc + b_ref[...] + other_ref[0, 0]).astype(o_ref.dtype)


@jax.jit
def model1_forward(x, weight, bias2d, other2d):
    """x: (B, Din) f32
       weight: (Dout, Din) f32  (PyTorch layout, passed through untouched)
       bias2d: (1, Dout) f32    (stored in this layout at init time)
       other2d: (1, 1) f32      (scalar parameter, SMEM)"""
    B, _ = x.shape
    Dout = weight.shape[0]

    return pl.pallas_call(
        linear_add_kernel,
        out_shape=jax.ShapeDtypeStruct((B, Dout), jnp.float32),
        in_specs=[
            pl.BlockSpec(memory_space=pltpu.MemorySpace.VMEM),   # x
            pl.BlockSpec(memory_space=pltpu.MemorySpace.VMEM),   # weight (Dout, Din)
            pl.BlockSpec(memory_space=pltpu.MemorySpace.VMEM),   # bias (1, Dout)
            pl.BlockSpec(memory_space=pltpu.MemorySpace.SMEM),   # other (1, 1)
        ],
        out_specs=pl.BlockSpec(memory_space=pltpu.MemorySpace.VMEM),
    )(x, weight, bias2d, other2d)


if __name__ == "__main__":
    key = jax.random.PRNGKey(0)
    k_x, k_w, k_b = jax.random.split(key, 3)

    B, Din, Dout = 8, 4, 5

    # Deterministic inputs / parameters mirroring Linear(4, 5) + scalar `other`.
    x1 = jax.random.normal(k_x, (B, Din), dtype=jnp.float32)
    weight = jax.random.normal(k_w, (Dout, Din), dtype=jnp.float32) * 0.1
    bias = jax.random.normal(k_b, (Dout,), dtype=jnp.float32) * 0.1
    other_val = jnp.float32(1.0)  # self.other parameter (initialized to 1)

    # Init-time (one-off) parameter layouts for the kernel: no per-call host ops.
    bias2d = bias.reshape(1, Dout)
    other2d = other_val.reshape(1, 1)

    out = model1_forward(x1, weight, bias2d, other2d)
    jax.block_until_ready(out)

    # Reference check in plain JAX (PyTorch semantics: x @ W^T + b + other).
    ref = x1 @ weight.T + bias + other_val
    assert out.shape == (B, Dout)
    assert jnp.allclose(out, ref, atol=1e-5, rtol=1e-5)

    print("KERNEL_OK")
</pallas_src>

<mosaic_0001>
module attributes {stable_mosaic.version = 11 : i64} {
  func.func @linear_add_kernel(%arg0: memref<8x4xf32, #tpu.memory_space<vmem>>, %arg1: memref<5x4xf32, #tpu.memory_space<vmem>>, %arg2: memref<1x5xf32, #tpu.memory_space<vmem>>, %arg3: memref<1x1xf32, #tpu.memory_space<smem>>, %arg4: memref<8x5xf32, #tpu.memory_space<vmem>>) attributes {dimension_semantics = [], scalar_prefetch = 0 : i64, scratch_operands = 0 : i64, tpu.core_type = #tpu.core_type<tc>} {
    %c0 = arith.constant 0 : index
    %c0_0 = arith.constant 0 : index
    %0 = vector.load %arg0[%c0, %c0_0] : memref<8x4xf32, #tpu.memory_space<vmem>>, vector<8x4xf32>
    %c0_1 = arith.constant 0 : index
    %c0_2 = arith.constant 0 : index
    %1 = vector.load %arg1[%c0_1, %c0_2] : memref<5x4xf32, #tpu.memory_space<vmem>>, vector<5x4xf32>
    %cst = arith.constant dense<0.000000e+00> : vector<8x5xf32>
    %2 = tpu.matmul %0, %1, %cst {dimension_numbers = #tpu.dot_dimension_numbers<[1], [1], [0], [0], [0, 0, 1, 0], [], []>} : vector<8x4xf32>, vector<5x4xf32>, vector<8x5xf32> -> vector<8x5xf32>
    %c0_3 = arith.constant 0 : index
    %c0_4 = arith.constant 0 : index
    %3 = vector.load %arg2[%c0_3, %c0_4] : memref<1x5xf32, #tpu.memory_space<vmem>>, vector<1x5xf32>
    %4 = vector.broadcast %3 : vector<1x5xf32> to vector<8x5xf32>
    %5 = arith.addf %2, %4 : vector<8x5xf32>
    %c0_5 = arith.constant 0 : index
    %c0_6 = arith.constant 0 : index
    %6 = memref.load %arg3[%c0_5, %c0_6] : memref<1x1xf32, #tpu.memory_space<smem>>
    %7 = vector.broadcast %6 : f32 to vector<8x5xf32>
    %8 = arith.addf %5, %7 : vector<8x5xf32>
    %c0_7 = arith.constant 0 : index
    %c0_8 = arith.constant 0 : index
    %9 = vector.load %arg4[%c0_7, %c0_8] : memref<8x5xf32, #tpu.memory_space<vmem>>, vector<8x5xf32>
    tpu.vector_store %arg4[%c0_7, %c0_8], %8 {strides = array<i32>} : memref<8x5xf32, #tpu.memory_space<vmem>>, vector<8x5xf32>,
    return
  }
}

</mosaic_0001>

<bundles_post_ra>
// kernel: model1_forward.1
= control target key start
LH: loop header
LB: loop body
LE: loop exit
PB: predicated region body
PF: predicated region fallthrough
CT: control target
= control target key end

     0   :  { %vm28_vm0 = vcmask 31744   ;;  %v161_v1 = vmov 0.0   ;;  %vm162_vm1 = vmmov 0   ;;  %s213_s0 = inlined_call_operand.vmem [shape: f32[8,4], index: 0, kind: input, shape index: {}]   ;;  %s214_s1 = inlined_call_operand.vmem [shape: f32[5,4], index: 1, kind: input, shape index: {}]   ;;  %s215_s2 = inlined_call_operand.vmem [shape: f32[1,5], index: 2, kind: input, shape index: {}]   ;;  %s216_s3 = inlined_call_operand.<no memory space> [shape: f32[1,1], index: 3, kind: input, shape index: {}]   ;;  %s217_s4 = inlined_call_operand.hbm [shape: f32[8,5], index: 4, kind: output, shape index: {}]  }
   0x1   :  { %v20_v0 = vld [vmem:[%s214_s1] sm:$0x1f]  ;;  %129 = vmatprep.subr.mxu0 %v161_v1  ;;  %131 = vmatprep.mubr.msk.f32.mxu0 %vm162_vm1, %v161_v1 }
   0x2   :  { %10 = vsyncpa [#allocation4], 0  ;;  %130 = vmatpush3.xpose.msk.msra.mxu0 %vm28_vm0, %v20_v0  ;;  %v19_v2 = vld [vmem:[%s213_s0] sm:$0xff]  ;;  %v106_v5 = vstv %s216_s3  ;;  %s163_s1 = smov [#allocation3]   ;;  %vm108_vm2 = vcmask 39936  }
   0x3   :  { %v124_v3 = vld [vmem:[%s215_s2] ss:$0 sm:$0xff]  ;;  %s116_s23 = sshll.u32 %s163_s1, 4  ;;  %s117_s23 = int_to_ptr.vmem [resolvable:$true] %s116_s23 }
   0x4   :  { %s137_s24 = scalar_lea.vmem %s117_s23, 128  ;;  %p142_p1 = scmp.lt.s32.totalorder %s117_s23, %s117_s23 }
   0x5   :  { %132 = vmatmul.mubr.msk.f32.vlgmr.msra.gmra.mrb[0].mxu0 %vm28_vm0, %v19_v2  ;;  %p138_p0 = scmp.ne.s32.totalorder %s117_s23, %s137_s24  ;;  %p143_p2 = scmp.lt.s32.totalorder %s137_s24, %s137_s24 }
   0x7   :  { %p144_p3 = por %p143_p2, %p142_p1 }
   0x9   :  { %p145_p4 = pnand %p144_p3, %p138_p0 }
  0xd8   :  { %v101_v4 = vpop.f32.mrb[0].mxu0 }
  0xd9   :  { %v102_v6 = vadd.f32 %v124_v3, %v101_v4  ;;  %v133_v7 = vpop.f32.mrb[1].mxu0 }
  0xdb   :  { %v107_v8 = vadd.f32 %v106_v5, %v102_v6 }
  0xdd   :  { %109 = vst.msk [vmem:[#allocation3] sm:$0xff] %vm108_vm2, %v107_v8 }
  0xde   :  { %148 = shalt.err (!%p145_p4)
}
  0xdf   :  { %s149_s25 = scalar_lea.hbm %s217_s4, 128 }
  0xe0   :  { %p150_p5 = scmp.ne.s32.totalorder %s217_s4, %s149_s25  ;;  %p153_p6 = scmp.lt.u32.totalorder %s149_s25, %s217_s4 }
  0xe2   :  { %p155_p7 = pnand %p153_p6, %p150_p5 }
  0xe4   :  { %158 = shalt.err (!%p155_p7)
}
  0xe5   :  { %119 = dma.vmem_to_hbm [thread:$0]  %s117_s23, 128, %s217_s4, [#allocation4]  }
  0xe6   :  { %159 = dma.done.wait [#allocation4], 128  }
  0xe7   :  { %160 = vsyncadd [#allocation4], 4294967168 }
  0xe8   :  { %123 = vsyncpa [#allocation4], 1 }

</bundles_post_ra>
